<compile_context>
chip_gen: v6e
topology: v6e:2x2x1
jax: 0.10.0
libtpu: 0.0.40
codegen_flags: <defaults>
</compile_context>

<pallas_src>
import functools

import jax
import jax.numpy as jnp
from jax.experimental import pallas as pl
from jax.experimental.pallas import tpu as pltpu


def _round_up(x, m):
    return (x + m - 1) // m * m


def _hw_budgets():
    """Per-TPU-generation step/VMEM budgets (heuristic, safe defaults)."""
    try:
        kind = jax.devices()[0].device_kind.lower()
    except Exception:  # pragma: no cover - defensive
        kind = ""
    if "v7" in kind:
        # v7x: 64 MiB physical VMEM, 2 TensorCores -> keep >= 2 grid steps.
        return dict(step_bytes=6 << 20, vmem_limit=32 << 20, min_steps=2,
                    mxu_min=128)
    if "v5" in kind:
        # v5e: 128 MiB physical VMEM, 1 TC, 4x128^2 MXU.
        return dict(step_bytes=20 << 20, vmem_limit=64 << 20, min_steps=1,
                    mxu_min=64)
    # v6e (and default): 128 MiB physical VMEM, 1 TC, 256-wide MXU.
    return dict(step_bytes=20 << 20, vmem_limit=64 << 20, min_steps=1,
                mxu_min=128)


def _sepconv1d_kernel(x_ref, wdw_ref, bdw_ref, wpw_ref, bpw_ref, out_ref,
                      xpad_ref, *, kernel, pad, l_in, l_dense, lpad, pack,
                      use_mxu):
    # x_ref   : (TB, C, L)          unpadded input chunk (TB batch elements)
    # wdw_ref : (PACK*C, K)         depthwise weights (pre-tiled over PACK)
    # bdw_ref : (PACK*C, 1)         depthwise bias    (pre-tiled over PACK)
    # wpw_ref : (NO, C)             pointwise (1x1) weights
    # bpw_ref : (NO, 1)             pointwise bias
    # out_ref : (TB, NO, L_dense)   dense (stride-1) separable-conv output
    # xpad_ref: (PACK*C, NB*LPAD)   slab scratch, NB = TB // PACK
    tb, c, _ = x_ref.shape
    no = out_ref.shape[1]
    nb = tb // pack
    w = nb * lpad
    gap = lpad - l_in
    fp = jnp.float32

    # ---- Stage 0: copy-in; zero ONLY the halo gap columns. ------------------
    # Data lanes are fully overwritten every step, so no full-slab memset.
    if gap:
        zgap = jnp.zeros((pack * c, gap), fp)          # hoisted out of the loop
    for blk in range(nb):                              # static unroll, NB small
        base = blk * lpad
        cols = [x_ref[p * nb + blk].astype(fp) for p in range(pack)]
        stacked = cols[0] if pack == 1 else jnp.concatenate(cols, axis=0)
        xpad_ref[:, base:base + l_in] = stacked        # full-sublane store
        if gap:
            xpad_ref[:, base + l_in:base + lpad] = zgap
    xp = xpad_ref[...]                                 # (PACK*C, W) f32

    # ---- Stage 1: depthwise conv: XLU rolls for taps, VPU FMAs. -------------
    # acc[row, base + j] = bias[row] + sum_k wdw[row, k] * xpad[row, base+j+k-pad]
    wdw = wdw_ref[...].astype(fp)                                    # (PACK*C, K)
    acc = jnp.broadcast_to(bdw_ref[...].astype(fp), (pack * c, w))   # bias init
    for k in range(kernel):                            # static unroll, K small
        shift = (pad - k) % w
        tap = xp if shift == 0 else pltpu.roll(xp, shift=shift, axis=1)
        acc = acc + wdw[:, k:k + 1] * tap

    # ---- Stage 2: pointwise 1x1 conv. ---------------------------------------
    bpw = bpw_ref[...].astype(fp)                      # (NO, 1)
    if use_mxu:
        # Large channel counts only (PACK == 1 on this path): bf16 operands,
        # f32 accumulation on the MXU.
        pws = [jnp.dot(wpw_ref[...].astype(jnp.bfloat16),
                       acc.astype(jnp.bfloat16),
                       preferred_element_type=jnp.float32) + bpw]
    else:
        # Tiny C/NO (this module): C broadcast-FMAs on the VPU per pack half.
        wpw = wpw_ref[...].astype(fp)                  # (NO, C)
        pws = []
        for p in range(pack):
            pw = jnp.broadcast_to(bpw, (no, w))
            for cc in range(c):
                row = p * c + cc
                pw = pw + wpw[:, cc:cc + 1] * acc[row:row + 1, :]
            pws.append(pw)

    # ---- Stage 3: one bulk store of all TB output slices. -------------------
    outs = []
    for t in range(tb):
        p, blk = divmod(t, nb)
        base = blk * lpad                              # lane-aligned base
        outs.append(pws[p][:, base:base + l_dense])
    out_ref[...] = jnp.stack(outs, axis=0).astype(out_ref.dtype)


def sep_conv1d(x, w_dw, b_dw, w_pw, b_pw, *, stride, pad):
    """Separable 1-D conv: pointwise(depthwise(x)).

    x    : (B, ni, L)   -- NCL, like torch.nn.Conv1d input
    w_dw : (ni, 1, K)   -- depthwise weight (groups=ni)
    b_dw : (ni,)
    w_pw : (no, ni, 1)  -- pointwise weight (kernel_size=1)
    b_pw : (no,)
    returns (B, no, L_out) with L_out = (L + 2*pad - K)//stride + 1
    """
    B, C, L = x.shape
    K = w_dw.shape[-1]
    NO = w_pw.shape[0]
    assert stride >= 1 and pad >= 0 and L + 2 * pad >= K
    L_out = (L + 2 * pad - K) // stride + 1
    L_dense = L + 2 * pad - K + 1              # stride-1 (dense) output length
    LPAD = _round_up(L + 2 * pad, 128)         # lane-aligned per-batch slab
    # Halo guard for the circular-roll scheme: taps reach at most `pad` columns
    # past either end of a batch element's data; both sides must land in the
    # zeroed gap.  gap = LPAD - L >= 2*pad >= pad always, but assert anyway.
    assert LPAD - L >= pad and LPAD >= L + 2 * pad, "insufficient roll halo"

    hw = _hw_budgets()
    use_mxu = min(C, NO) >= hw["mxu_min"]
    # Sublane packing: with C < 8 every (C, lanes) vreg would be half empty;
    # stack PACK batch elements along the sublane axis so vregs are full.
    PACK = 1 if use_mxu else max(1, 8 // max(C, 1))

    itemsize = x.dtype.itemsize

    def step_bytes(tb):
        # double-buffered auto-pipelined I/O blocks + slab + roll/acc/pw temps
        nb = tb // PACK
        width = nb * LPAD
        io = 2 * (tb * C * L + tb * NO * L_dense) * itemsize
        rows = 3 * _round_up(PACK * C, 8) + PACK * _round_up(NO, 8)
        return io + rows * width * 4

    # TB selection: largest feasible tile (budget + keep >=2 grid steps on
    # v7x), preferring fewer grid steps then least batch padding.
    MAX_TB = min(16, _round_up(B, PACK))       # cap the static unroll
    feasible = []
    for cand in range(PACK, MAX_TB + 1, PACK):
        if step_bytes(cand) > hw["step_bytes"]:
            break
        if (hw["min_steps"] > 1 and cand > PACK
                and pl.cdiv(B, cand) < hw["min_steps"]):
            break                              # keep both v7x TensorCores busy
        feasible.append(cand)
    feasible = feasible or [PACK]
    TB = min(feasible, key=lambda c: (pl.cdiv(B, c), _round_up(B, c) - B, -c))
    # TODO(synk): very long L (slab wider than VMEM) would need L-tiling with
    # halo exchange; not required for this module's configurations.

    B_pad = _round_up(B, TB)
    if B_pad != B:                             # ragged batch -> pad, slice back
        x = jnp.pad(x, ((0, B_pad - B), (0, 0), (0, 0)))
    G = B_pad // TB
    NB = TB // PACK

    # Flatten / pre-tile the tiny parameter tensors once in the wrapper.
    wdw2 = jnp.tile(w_dw.reshape(C, K), (PACK, 1))     # (PACK*C, K)
    bdw2 = jnp.tile(b_dw.reshape(C, 1), (PACK, 1))     # (PACK*C, 1)
    wpw2 = w_pw.reshape(NO, C)
    if use_mxu:
        wpw2 = wpw2.astype(jnp.bfloat16)
    bpw2 = b_pw.reshape(NO, 1)

    kern = functools.partial(
        _sepconv1d_kernel, kernel=K, pad=pad, l_in=L, l_dense=L_dense,
        lpad=LPAD, pack=PACK, use_mxu=use_mxu)

    out_dense = pl.pallas_call(
        kern,
        out_shape=jax.ShapeDtypeStruct((B_pad, NO, L_dense), x.dtype),
        grid=(G,),
        in_specs=[
            pl.BlockSpec((TB, C, L), lambda g: (g, 0, 0)),      # batch chunk
            pl.BlockSpec((PACK * C, K), lambda g: (0, 0)),      # resident params
            pl.BlockSpec((PACK * C, 1), lambda g: (0, 0)),
            pl.BlockSpec((NO, C), lambda g: (0, 0)),
            pl.BlockSpec((NO, 1), lambda g: (0, 0)),
        ],
        out_specs=pl.BlockSpec((TB, NO, L_dense), lambda g: (g, 0, 0)),
        scratch_shapes=[pltpu.VMEM((PACK * C, NB * LPAD), jnp.float32)],
        compiler_params=pltpu.CompilerParams(
            dimension_semantics=("parallel",),
            vmem_limit_bytes=hw["vmem_limit"]),
    )(x, wdw2, bdw2, wpw2, bpw2)

    out = out_dense[:B]
    if stride > 1:
        # The 1x1 pointwise conv commutes with downsampling, so stride is a
        # wrapper-side slice of the dense output (avoids strided lane slicing
        # inside the kernel).
        out = out[:, :, ::stride]
    return out


def _reference_sep_conv1d(x, w_dw, b_dw, w_pw, b_pw, *, stride, pad):
    """Pure-JAX reference with identical semantics to the PyTorch module."""
    xp = jnp.pad(x, ((0, 0), (0, 0), (pad, pad))).astype(jnp.float32)
    K = w_dw.shape[-1]
    L_out = (xp.shape[-1] - K) // stride + 1
    dw = jnp.zeros(x.shape[:2] + (L_out,), jnp.float32)
    for k in range(K):
        tap = xp[:, :, k: k + (L_out - 1) * stride + 1: stride]
        dw = dw + w_dw[:, 0, k][None, :, None] * tap
    dw = dw + b_dw[None, :, None]
    pw = jnp.einsum('oc,bcl->bol', w_pw[:, :, 0], dw) + b_pw[None, :, None]
    return pw.astype(x.dtype)


if __name__ == "__main__":
    def _run_case(key, B, NI, NO, L, K, stride, pad):
        kx, k1, k2, k3, k4 = jax.random.split(key, 5)
        x = jax.random.normal(kx, (B, NI, L), jnp.float32)
        # Deterministic synthetic parameters (shapes match nn.Conv1d weights):
        w_dw = 0.1 * jax.random.normal(k1, (NI, 1, K), jnp.float32)   # depthwise.weight
        b_dw = 0.1 * jax.random.normal(k2, (NI,), jnp.float32)        # depthwise.bias
        w_pw = 0.1 * jax.random.normal(k3, (NO, NI, 1), jnp.float32)  # pointwise.weight
        b_pw = 0.1 * jax.random.normal(k4, (NO,), jnp.float32)        # pointwise.bias

        out = sep_conv1d(x, w_dw, b_dw, w_pw, b_pw, stride=stride, pad=pad)
        out = jax.block_until_ready(out)

        ref = _reference_sep_conv1d(x, w_dw, b_dw, w_pw, b_pw,
                                    stride=stride, pad=pad)
        L_out = (L + 2 * pad - K) // stride + 1
        assert out.shape == (B, NO, L_out), out.shape
        assert jnp.allclose(out, ref, atol=1e-5, rtol=1e-5), \
            float(jnp.max(jnp.abs(out - ref)))

    root = jax.random.PRNGKey(0)
    k_a, k_b = jax.random.split(root)

    # Module config: _SepConv1d(ni=4, no=8, kernel=3, stride=1, pad=1)
    _run_case(k_a, B=2, NI=4, NO=8, L=16, K=3, stride=1, pad=1)
    # Strided config (odd batch exercises the batch-padding path; stride is a
    # wrapper-side slice of the same dense kernel).
    _run_case(k_b, B=3, NI=4, NO=8, L=20, K=5, stride=2, pad=2)

    print("KERNEL_OK")
</pallas_src>

<mosaic_0001>
module attributes {stable_mosaic.version = 11 : i64} {
  func.func @_sepconv1d_kernel(%arg0: i32, %arg1: memref<2x4x16xf32, #tpu.memory_space<vmem>>, %arg2: memref<8x3xf32, #tpu.memory_space<vmem>>, %arg3: memref<8x1xf32, #tpu.memory_space<vmem>>, %arg4: memref<8x4xf32, #tpu.memory_space<vmem>>, %arg5: memref<8x1xf32, #tpu.memory_space<vmem>>, %arg6: memref<2x8x16xf32, #tpu.memory_space<vmem>>, %arg7: memref<8x128xf32, #tpu.memory_space<vmem>>) attributes {dimension_semantics = [#tpu.dimension_semantics<parallel>], iteration_bounds = array<i64: 1>, scalar_prefetch = 0 : i64, scratch_operands = 1 : i64, tpu.core_type = #tpu.core_type<tc>, window_params = [{transform_indices = @transform_0, window_bounds = array<i64: 2, 4, 16>}, {pipeline_mode = #tpu.pipeline_mode<synchronous>, transform_indices = @transform_1, window_bounds = array<i64: 8, 3>}, {pipeline_mode = #tpu.pipeline_mode<synchronous>, transform_indices = @transform_2, window_bounds = array<i64: 8, 1>}, {pipeline_mode = #tpu.pipeline_mode<synchronous>, transform_indices = @transform_3, window_bounds = array<i64: 8, 4>}, {pipeline_mode = #tpu.pipeline_mode<synchronous>, transform_indices = @transform_4, window_bounds = array<i64: 8, 1>}, {transform_indices = @transform_5, window_bounds = array<i64: 2, 8, 16>}]} {
    %cst = arith.constant 0.000000e+00 : f32
    %0 = vector.broadcast %cst : f32 to vector<8x112xf32>
    %c0 = arith.constant 0 : index
    %c0_0 = arith.constant 0 : index
    %c0_1 = arith.constant 0 : index
    %1 = vector.load %arg1[%c0, %c0_0, %c0_1] : memref<2x4x16xf32, #tpu.memory_space<vmem>>, vector<1x4x16xf32>
    %2 = vector.shape_cast %1 : vector<1x4x16xf32> to vector<4x16xf32>
    %c1 = arith.constant 1 : index
    %c0_2 = arith.constant 0 : index
    %c0_3 = arith.constant 0 : index
    %3 = vector.load %arg1[%c1, %c0_2, %c0_3] : memref<2x4x16xf32, #tpu.memory_space<vmem>>, vector<1x4x16xf32>
    %4 = vector.shape_cast %3 : vector<1x4x16xf32> to vector<4x16xf32>
    %5 = tpu.concatenate %2, %4 in 0 : vector<4x16xf32>, vector<4x16xf32> -> vector<8x16xf32>
    %c0_4 = arith.constant 0 : index
    %c0_5 = arith.constant 0 : index
    %6 = vector.load %arg7[%c0_4, %c0_5] : memref<8x128xf32, #tpu.memory_space<vmem>>, vector<8x16xf32>
    tpu.vector_store %arg7[%c0_4, %c0_5], %5 {strides = array<i32>} : memref<8x128xf32, #tpu.memory_space<vmem>>, vector<8x16xf32>,
    %c0_6 = arith.constant 0 : index
    %c16 = arith.constant 16 : index
    %7 = vector.load %arg7[%c0_6, %c16] : memref<8x128xf32, #tpu.memory_space<vmem>>, vector<8x112xf32>
    tpu.vector_store %arg7[%c0_6, %c16], %0 {strides = array<i32>} : memref<8x128xf32, #tpu.memory_space<vmem>>, vector<8x112xf32>,
    %c0_7 = arith.constant 0 : index
    %c0_8 = arith.constant 0 : index
    %8 = vector.load %arg7[%c0_7, %c0_8] : memref<8x128xf32, #tpu.memory_space<vmem>>, vector<8x128xf32>
    %c0_9 = arith.constant 0 : index
    %c0_10 = arith.constant 0 : index
    %9 = vector.load %arg2[%c0_9, %c0_10] : memref<8x3xf32, #tpu.memory_space<vmem>>, vector<8x3xf32>
    %c0_11 = arith.constant 0 : index
    %c0_12 = arith.constant 0 : index
    %10 = vector.load %arg3[%c0_11, %c0_12] : memref<8x1xf32, #tpu.memory_space<vmem>>, vector<8x1xf32>
    %11 = vector.shape_cast %10 : vector<8x1xf32> to vector<8x1xf32>
    %12 = vector.broadcast %11 : vector<8x1xf32> to vector<8x128xf32>
    %c1_i32 = arith.constant 1 : i32
    %13 = tpu.dynamic_rotate %8 by %c1_i32 dim 1 : vector<8x128xf32>, i32 -> vector<8x128xf32>
    %14 = vector.extract_strided_slice %9 {offsets = [0, 0], sizes = [8, 1], strides = [1, 1]} : vector<8x3xf32> to vector<8x1xf32>
    %15 = vector.broadcast %14 : vector<8x1xf32> to vector<8x128xf32>
    %16 = arith.mulf %15, %13 : vector<8x128xf32>
    %17 = arith.addf %12, %16 : vector<8x128xf32>
    %18 = vector.extract_strided_slice %9 {offsets = [0, 1], sizes = [8, 1], strides = [1, 1]} : vector<8x3xf32> to vector<8x1xf32>
    %19 = vector.broadcast %18 : vector<8x1xf32> to vector<8x128xf32>
    %20 = arith.mulf %19, %8 : vector<8x128xf32>
    %21 = arith.addf %17, %20 : vector<8x128xf32>
    %c127_i32 = arith.constant 127 : i32
    %22 = tpu.dynamic_rotate %8 by %c127_i32 dim 1 : vector<8x128xf32>, i32 -> vector<8x128xf32>
    %23 = vector.extract_strided_slice %9 {offsets = [0, 2], sizes = [8, 1], strides = [1, 1]} : vector<8x3xf32> to vector<8x1xf32>
    %24 = vector.broadcast %23 : vector<8x1xf32> to vector<8x128xf32>
    %25 = arith.mulf %24, %22 : vector<8x128xf32>
    %26 = arith.addf %21, %25 : vector<8x128xf32>
    %c0_13 = arith.constant 0 : index
    %c0_14 = arith.constant 0 : index
    %27 = vector.load %arg5[%c0_13, %c0_14] : memref<8x1xf32, #tpu.memory_space<vmem>>, vector<8x1xf32>
    %c0_15 = arith.constant 0 : index
    %c0_16 = arith.constant 0 : index
    %28 = vector.load %arg4[%c0_15, %c0_16] : memref<8x4xf32, #tpu.memory_space<vmem>>, vector<8x4xf32>
    %29 = vector.shape_cast %27 : vector<8x1xf32> to vector<8x1xf32>
    %30 = vector.broadcast %29 : vector<8x1xf32> to vector<8x128xf32>
    %31 = vector.extract_strided_slice %28 {offsets = [0, 0], sizes = [8, 1], strides = [1, 1]} : vector<8x4xf32> to vector<8x1xf32>
    %32 = vector.extract_strided_slice %26 {offsets = [0, 0], sizes = [1, 128], strides = [1, 1]} : vector<8x128xf32> to vector<1x128xf32>
    %33 = vector.broadcast %31 : vector<8x1xf32> to vector<8x128xf32>
    %34 = vector.broadcast %32 : vector<1x128xf32> to vector<8x128xf32>
    %35 = arith.mulf %33, %34 : vector<8x128xf32>
    %36 = arith.addf %30, %35 : vector<8x128xf32>
    %37 = vector.extract_strided_slice %28 {offsets = [0, 1], sizes = [8, 1], strides = [1, 1]} : vector<8x4xf32> to vector<8x1xf32>
    %38 = vector.extract_strided_slice %26 {offsets = [1, 0], sizes = [1, 128], strides = [1, 1]} : vector<8x128xf32> to vector<1x128xf32>
    %39 = vector.broadcast %37 : vector<8x1xf32> to vector<8x128xf32>
    %40 = vector.broadcast %38 : vector<1x128xf32> to vector<8x128xf32>
    %41 = arith.mulf %39, %40 : vector<8x128xf32>
    %42 = arith.addf %36, %41 : vector<8x128xf32>
    %43 = vector.extract_strided_slice %28 {offsets = [0, 2], sizes = [8, 1], strides = [1, 1]} : vector<8x4xf32> to vector<8x1xf32>
    %44 = vector.extract_strided_slice %26 {offsets = [2, 0], sizes = [1, 128], strides = [1, 1]} : vector<8x128xf32> to vector<1x128xf32>
    %45 = vector.broadcast %43 : vector<8x1xf32> to vector<8x128xf32>
    %46 = vector.broadcast %44 : vector<1x128xf32> to vector<8x128xf32>
    %47 = arith.mulf %45, %46 : vector<8x128xf32>
    %48 = arith.addf %42, %47 : vector<8x128xf32>
    %49 = vector.extract_strided_slice %28 {offsets = [0, 3], sizes = [8, 1], strides = [1, 1]} : vector<8x4xf32> to vector<8x1xf32>
    %50 = vector.extract_strided_slice %26 {offsets = [3, 0], sizes = [1, 128], strides = [1, 1]} : vector<8x128xf32> to vector<1x128xf32>
    %51 = vector.broadcast %49 : vector<8x1xf32> to vector<8x128xf32>
    %52 = vector.broadcast %50 : vector<1x128xf32> to vector<8x128xf32>
    %53 = arith.mulf %51, %52 : vector<8x128xf32>
    %54 = arith.addf %48, %53 : vector<8x128xf32>
    %55 = vector.shape_cast %27 : vector<8x1xf32> to vector<8x1xf32>
    %56 = vector.broadcast %55 : vector<8x1xf32> to vector<8x128xf32>
    %57 = vector.extract_strided_slice %28 {offsets = [0, 0], sizes = [8, 1], strides = [1, 1]} : vector<8x4xf32> to vector<8x1xf32>
    %58 = vector.extract_strided_slice %26 {offsets = [4, 0], sizes = [1, 128], strides = [1, 1]} : vector<8x128xf32> to vector<1x128xf32>
    %59 = vector.broadcast %57 : vector<8x1xf32> to vector<8x128xf32>
    %60 = vector.broadcast %58 : vector<1x128xf32> to vector<8x128xf32>
    %61 = arith.mulf %59, %60 : vector<8x128xf32>
    %62 = arith.addf %56, %61 : vector<8x128xf32>
    %63 = vector.extract_strided_slice %28 {offsets = [0, 1], sizes = [8, 1], strides = [1, 1]} : vector<8x4xf32> to vector<8x1xf32>
    %64 = vector.extract_strided_slice %26 {offsets = [5, 0], sizes = [1, 128], strides = [1, 1]} : vector<8x128xf32> to vector<1x128xf32>
    %65 = vector.broadcast %63 : vector<8x1xf32> to vector<8x128xf32>
    %66 = vector.broadcast %64 : vector<1x128xf32> to vector<8x128xf32>
    %67 = arith.mulf %65, %66 : vector<8x128xf32>
    %68 = arith.addf %62, %67 : vector<8x128xf32>
    %69 = vector.extract_strided_slice %28 {offsets = [0, 2], sizes = [8, 1], strides = [1, 1]} : vector<8x4xf32> to vector<8x1xf32>
    %70 = vector.extract_strided_slice %26 {offsets = [6, 0], sizes = [1, 128], strides = [1, 1]} : vector<8x128xf32> to vector<1x128xf32>
    %71 = vector.broadcast %69 : vector<8x1xf32> to vector<8x128xf32>
    %72 = vector.broadcast %70 : vector<1x128xf32> to vector<8x128xf32>
    %73 = arith.mulf %71, %72 : vector<8x128xf32>
    %74 = arith.addf %68, %73 : vector<8x128xf32>
    %75 = vector.extract_strided_slice %28 {offsets = [0, 3], sizes = [8, 1], strides = [1, 1]} : vector<8x4xf32> to vector<8x1xf32>
    %76 = vector.extract_strided_slice %26 {offsets = [7, 0], sizes = [1, 128], strides = [1, 1]} : vector<8x128xf32> to vector<1x128xf32>
    %77 = vector.broadcast %75 : vector<8x1xf32> to vector<8x128xf32>
    %78 = vector.broadcast %76 : vector<1x128xf32> to vector<8x128xf32>
    %79 = arith.mulf %77, %78 : vector<8x128xf32>
    %80 = arith.addf %74, %79 : vector<8x128xf32>
    %81 = vector.extract_strided_slice %54 {offsets = [0, 0], sizes = [8, 16], strides = [1, 1]} : vector<8x128xf32> to vector<8x16xf32>
    %82 = vector.extract_strided_slice %80 {offsets = [0, 0], sizes = [8, 16], strides = [1, 1]} : vector<8x128xf32> to vector<8x16xf32>
    %83 = vector.shape_cast %81 : vector<8x16xf32> to vector<1x8x16xf32>
    %84 = vector.shape_cast %82 : vector<8x16xf32> to vector<1x8x16xf32>
    %85 = tpu.concatenate %83, %84 in 0 : vector<1x8x16xf32>, vector<1x8x16xf32> -> vector<2x8x16xf32>
    %c0_17 = arith.constant 0 : index
    %c0_18 = arith.constant 0 : index
    %c0_19 = arith.constant 0 : index
    %86 = vector.load %arg6[%c0_17, %c0_18, %c0_19] : memref<2x8x16xf32, #tpu.memory_space<vmem>>, vector<2x8x16xf32>
    tpu.vector_store %arg6[%c0_17, %c0_18, %c0_19], %85 {strides = array<i32>} : memref<2x8x16xf32, #tpu.memory_space<vmem>>, vector<2x8x16xf32>,
    return
  }
  func.func @transform_0(%arg0: i32) -> (i32, i32, i32) {
    %c0_i32 = arith.constant 0 : i32
    %c0_i32_0 = arith.constant 0 : i32
    %c0_i32_1 = arith.constant 0 : i32
    return %arg0, %c0_i32, %c0_i32_0 : i32, i32, i32
  }
  func.func @transform_1(%arg0: i32) -> (i32, i32) {
    %c0_i32 = arith.constant 0 : i32
    %c0_i32_0 = arith.constant 0 : i32
    %c0_i32_1 = arith.constant 0 : i32
    return %c0_i32, %c0_i32_0 : i32, i32
  }
  func.func @transform_2(%arg0: i32) -> (i32, i32) {
    %c0_i32 = arith.constant 0 : i32
    %c0_i32_0 = arith.constant 0 : i32
    %c0_i32_1 = arith.constant 0 : i32
    return %c0_i32, %c0_i32_0 : i32, i32
  }
  func.func @transform_3(%arg0: i32) -> (i32, i32) {
    %c0_i32 = arith.constant 0 : i32
    %c0_i32_0 = arith.constant 0 : i32
    %c0_i32_1 = arith.constant 0 : i32
    return %c0_i32, %c0_i32_0 : i32, i32
  }
  func.func @transform_4(%arg0: i32) -> (i32, i32) {
    %c0_i32 = arith.constant 0 : i32
    %c0_i32_0 = arith.constant 0 : i32
    %c0_i32_1 = arith.constant 0 : i32
    return %c0_i32, %c0_i32_0 : i32, i32
  }
  func.func @transform_5(%arg0: i32) -> (i32, i32, i32) {
    %c0_i32 = arith.constant 0 : i32
    %c0_i32_0 = arith.constant 0 : i32
    %c0_i32_1 = arith.constant 0 : i32
    return %arg0, %c0_i32, %c0_i32_0 : i32, i32, i32
  }
}

</mosaic_0001>

<bundles_post_ra>
// kernel: tpu_custom_call.1
= control target key start
LH: loop header
LB: loop body
LE: loop exit
PB: predicated region body
PF: predicated region fallthrough
CT: control target
= control target key end

     0   :  { %v195_v1 = vmov 1   ;;  %v196_v2 = vmov 0   ;;  %vm27_vm0 = vcmask 1043456   ;;  %vm29_vm1 = vcmask 130048   ;;  %s259_s0 = inlined_call_operand.vmem [shape: f32[2,4,16], index: 0, kind: input, shape index: {}]   ;;  %s260_s1 = inlined_call_operand.vmem [shape: f32[8,3], index: 1, kind: input, shape index: {}]   ;;  %s261_s2 = inlined_call_operand.vmem [shape: f32[8,1], index: 2, kind: input, shape index: {}]   ;;  %s262_s3 = inlined_call_operand.vmem [shape: f32[8,4], index: 3, kind: input, shape index: {}]   ;;  %s263_s4 = inlined_call_operand.vmem [shape: f32[8,1], index: 4, kind: input, shape index: {}]   ;;  %s264_s5 = inlined_call_operand.hbm [shape: f32[2,8,16], index: 5, kind: output, shape index: {}]  }
   0x1   :  { %v34_v0 = vld [vmem:[%s260_s1] sm:$0xff]  ;;  %166 = vset.pattern.permute.xlu1 %v195_v1  ;;  %165 = vset.pattern.permute.xlu0 %v196_v2  ;;  %vm31_vm2 = vcmask 1047680  }
   0x2   :  { %v21_v3 = vld [vmem:[%s259_s0] sm:$0xf]  ;;  %v154_v4 = vld [vmem:[%s259_s0 + $0x4] sm:$0xf]  ;;  %51 = vperm.xlu1 %166, %v34_v0   ;;  %45 = vperm.xlu0 %165, %v34_v0  }
   0x3   :  { %v25_v5 = vrot.slane %v154_v4, 4  ;;  %v35_v6 = vld [vmem:[%s261_s2] sm:$0xff] }
   0x4   :  { %10 = vsyncpa [#allocation4], 0  ;;  %v197_v8 = vmov 2   ;;  %v198_v9 = vmov 0.0   ;;  %v64_v10 = vld [vmem:[%s263_s4] sm:$0xff]  ;;  %s199_s26 = smov 1   ;;  %v76_v18 = vlaneseq }
   0x5   :  { %v28_v7 = vsel %vm27_vm0, %v21_v3, %v25_v5  ;;  %v65_v12 = vld [vmem:[%s262_s3] sm:$0xff]  ;;  %s200_s28 = smov 127   ;;  %v201_v13 = vmov 3   ;;  %s202_s3 = smov [#allocation3]  }
   0x6   :  { %30 = vst.msk [vmem:[#allocation2] sm:$0xff] %vm29_vm1, %v28_v7  ;;  %167 = vset.pattern.permute.xlu1 %v197_v8  ;;  %38 = vperm.xlu0 %165, %v35_v6   ;;  %v77_v23 = vshrl.u32 %v76_v18, 7  ;;  %s143_s4 = sshll.u32 %s202_s3, 4  ;;  %s144_s4 = int_to_ptr.vmem [resolvable:$true] %s143_s4 }
   0x7   :  { %32 = vst.msk [vmem:[#allocation2] sm:$0xff] %vm31_vm2, %v198_v9  ;;  %59 = vperm.xlu1 %167, %v34_v0   ;;  %s173_s29 = scalar_lea.vmem %s144_s4, 256  ;;  %p178_p1 = scmp.lt.s32.totalorder %s144_s4, %s144_s4 }
   0x8   :  { %v78_v28 = vsub.s32 0, %v77_v23  ;;  %v114_v29 = vsub.s32 4, %v77_v23  ;;  %v88_v31 = vsub.s32 1, %v77_v23  ;;  %v120_v32 = vsub.s32 5, %v77_v23  ;;  %p174_p0 = scmp.ne.s32.totalorder %s144_s4, %s173_s29  ;;  %p179_p2 = scmp.lt.s32.totalorder %s173_s29, %s173_s29 }
   0x9   :  { %v98_v34 = vsub.s32 2, %v77_v23  ;;  %v126_v35 = vsub.s32 6, %v77_v23  ;;  %v108_v41 = vsub.s32 3, %v77_v23  ;;  %v132_v42 = vsub.s32 7, %v77_v23 }
   0xa   :  { %p180_p3 = por %p179_p2, %p178_p1 }
   0xb   :  { %168 = vset.pattern.permute.xlu1 %v196_v2 }
   0xc   :  { %68 = vperm.xlu1 %168, %v64_v10   ;;  %p181_p4 = pnand %p180_p3, %p174_p0 }
   0xe   :  { %v33_v11 = vld [vmem:[#allocation2] sm:$0xff] }
   0xf   :  { %41 = vrot.lane.b32.xlu0 %v33_v11, %s199_s26 }
  0x10   :  { %56 = vrot.lane.b32.xlu1 %v33_v11, %s200_s28 }
  0x11   :  { %170 = vset.pattern.permute.xlu1 %v197_v8 }
  0x13   :  { %73 = vperm.xlu0 %165, %v65_v12  }
  0x14   :  { %93 = vperm.xlu1 %170, %v65_v12  }
  0x17   :  { %169 = vset.pattern.permute.xlu0 %v195_v1 }
  0x18   :  { %83 = vperm.xlu0 %169, %v65_v12   ;;  %171 = vset.pattern.permute.xlu1 %v201_v13 }
  0x19   :  { %103 = vperm.xlu1 %171, %v65_v12  }
  0x1c   :  { %172 = vset.pattern.permute.xlu0 %v201_v13 }
  0x7d   :  { %v52_v14 = vpop.permute.xlu1 %51  ;;  %v46_v15 = vpop.permute.xlu0 %45 }
  0x7e   :  { %v54_v24 = vmul.f32 %v52_v14, %v33_v11 }
  0x81   :  { %v39_v16 = vpop.permute.xlu0 %38 }
  0x82   :  { %v60_v17 = vpop.permute.xlu1 %59 }
  0x85   :  { %v42_v19 = vpop.permute.xlu0 %41 }
  0x86   :  { %v48_v20 = vmul.f32 %v46_v15, %v42_v19 }
  0x87   :  { %v69_v21 = vpop.permute.xlu1 %68 }
  0x88   :  { %v49_v22 = vadd.f32 %v48_v20, %v39_v16 }
  0x8a   :  { %v55_v26 = vadd.f32 %v54_v24, %v49_v22 }
  0x8b   :  { %v57_v25 = vpop.permute.xlu1 %56 }
  0x8c   :  { %v62_v27 = vmul.f32 %v60_v17, %v57_v25 }
  0x8e   :  { %v74_v30 = vpop.permute.xlu0 %73  ;;  %v63_v33 = vadd.f32 %v62_v27, %v55_v26 }
  0x8f   :  { %v94_v36 = vpop.permute.xlu1 %93 }
  0x90   :  { %v79_v37 = vrot.slane %v63_v33, %v78_v28  ;;  %v115_v38 = vrot.slane %v63_v33, %v114_v29  ;;  %v89_v39 = vrot.slane %v63_v33, %v88_v31  ;;  %v121_v40 = vrot.slane %v63_v33, %v120_v32 }
  0x91   :  { %v99_v45 = vrot.slane %v63_v33, %v98_v34  ;;  %v127_v46 = vrot.slane %v63_v33, %v126_v35  ;;  %v109_v53 = vrot.slane %v63_v33, %v108_v41  ;;  %v133_v54 = vrot.slane %v63_v33, %v132_v42 }
  0x92   :  { %v80_v43 = vmul.f32 %v79_v37, %v74_v30  ;;  %v116_v44 = vmul.f32 %v115_v38, %v74_v30 }
  0x93   :  { %v84_v47 = vpop.permute.xlu0 %83  ;;  %v100_v55 = vmul.f32 %v99_v45, %v94_v36  ;;  %v128_v56 = vmul.f32 %v127_v46, %v94_v36 }
  0x94   :  { %v81_v48 = vadd.f32 %v80_v43, %v69_v21  ;;  %v117_v49 = vadd.f32 %v116_v44, %v69_v21  ;;  %v90_v50 = vmul.f32 %v89_v39, %v84_v47  ;;  %v122_v51 = vmul.f32 %v121_v40, %v84_v47  ;;  %v104_v52 = vpop.permute.xlu1 %103 }
  0x95   :  { %v110_v60 = vmul.f32 %v109_v53, %v104_v52  ;;  %v134_v62 = vmul.f32 %v133_v54, %v104_v52 }
  0x96   :  { %v91_v57 = vadd.f32 %v90_v50, %v81_v48  ;;  %v123_v58 = vadd.f32 %v122_v51, %v117_v49 }
  0x98   :  { %v101_v59 = vadd.f32 %v100_v55, %v91_v57  ;;  %v129_v61 = vadd.f32 %v128_v56, %v123_v58 }
  0x9a   :  { %v111_v63 = vadd.f32 %v110_v60, %v101_v59  ;;  %v135_v0 = vadd.f32 %v134_v62, %v129_v61 }
  0x9c   :  { %136 = vst.msk [vmem:[#allocation3] sm:$0xff] %vm29_vm1, %v111_v63  ;;  %137 = vst.msk [vmem:[#allocation3 + $0x8] sm:$0xff] %vm29_vm1, %v135_v0 }
  0x9d   :  { %184 = shalt.err (!%p181_p4)
}
  0x9e   :  { %s203_s30 = smov 128   ;;  %s204_s6 = smov 8  }
  0x9f   :  { %149 = dma.vmem_to_hbm [thread:$0]  %s144_s4, 256, %s264_s5, [#allocation4], %s203_s30, %s203_s30, %s204_s6  }
  0xa0   :  { %193 = dma.done.wait [#allocation4], 256  }
  0xa1   :  { %194 = vsyncadd [#allocation4], 4294967040 }
  0xa2   :  { %153 = vsyncpa [#allocation4], 1 }

</bundles_post_ra>
